<compile_context>
chip_gen: v7x
topology: tpu7x:2x2x1
jax: 0.10.0
libtpu: 0.0.40
codegen_flags: <defaults>
</compile_context>

<pallas_src>
import jax
import jax.numpy as jnp
from jax import lax
from jax.experimental import pallas as pl
from jax.experimental.pallas import tpu as pltpu


def _round_up(a, b):
    return ((a + b - 1) // b) * b


def _conv3d_matmul_kernel(p_ref, w_ref, b_ref, o_ref):
    # p_ref: (TM, Kp)  bf16/f32  im2col patch rows (zero-padded contraction dim)
    # w_ref: (Kp, Cp)  bf16/f32  flattened + zero-padded weights
    # b_ref: (1,  Cp)  f32       zero-padded bias row
    # o_ref: (TM, Cp)  f32       lane-dense output slab
    acc = jnp.dot(p_ref[...], w_ref[...], preferred_element_type=jnp.float32)
    o_ref[...] = acc + b_ref[...]


def conv3d_pallas(x, weight, bias=None, stride=1, padding=0, dilation=1, groups=1,
                  compute_dtype=jnp.bfloat16):
    """x: (N, Cin, D, H, W), weight: (Cout, Cin, K, K, K) — PyTorch conventions.

    Returns (N, Cout, Do, Ho, Wo) in float32.
    """
    # TODO(synk): only the module defaults (stride=1, padding=0, dilation=1,
    # groups=1) are implemented; other hyper-params need strided/padded windows.
    assert stride == 1 and padding == 0 and dilation == 1 and groups == 1

    N, C_in, D, H, W = x.shape
    C_out, C_in_w, K, K2, K3 = weight.shape
    assert C_in_w == C_in and K == K2 == K3

    Do, Ho, Wo = D - K + 1, H - K + 1, W - K + 1
    M = N * Do * Ho * Wo                     # batch fused into matmul rows
    Kc = K * K * K * C_in                    # 81 for the module defaults

    # Padded (lane-dense) dims: contraction and output both full 128-lane runs.
    Kp = _round_up(max(Kc, 128), 128)
    Cp = _round_up(max(C_out, 128), 128)
    Mp = _round_up(M, 16)                    # allows 2 sublane-aligned M tiles

    # ---- wrapper-side im2col (layout plumbing, hoisted out of the kernel) ----
    # TODO(synk): for very large D/H/W the im2col HBM amplification (~K^3x)
    # would warrant moving the patch construction back into a tiled kernel.
    x_cl = jnp.transpose(x, (0, 2, 3, 4, 1))                 # (N, D, H, W, Cin)
    wins = []
    for kd in range(K):
        for kh in range(K):
            for kw in range(K):
                wins.append(x_cl[:, kd:kd + Do, kh:kh + Ho, kw:kw + Wo, :])
    # (N, Do, Ho, Wo, K^3, Cin) -> (M, Kc); tap-major, cin-fastest column order.
    patches = jnp.stack(wins, axis=4).reshape(M, Kc).astype(compute_dtype)
    patches_p = jnp.pad(patches, ((0, Mp - M), (0, Kp - Kc)))

    # Weight flattened in matching (kd, kh, kw, cin) row order, zero-padded.
    w_flat = (jnp.transpose(weight, (2, 3, 4, 1, 0))
              .reshape(Kc, C_out).astype(compute_dtype))
    w_p = jnp.pad(w_flat, ((0, Kp - Kc), (0, Cp - C_out)))

    if bias is not None:
        b_p = jnp.pad(bias.astype(jnp.float32).reshape(1, C_out),
                      ((0, 0), (0, Cp - C_out)))
    else:
        b_p = jnp.zeros((1, Cp), jnp.float32)

    # Two parallel M tiles: feeds both v7x TensorCores; negligible overhead on
    # single-TC v5e/v6e (2 grid steps total).
    num_tiles = 2 if (Mp % 16 == 0) else 1
    TM = Mp // num_tiles

    out_p = pl.pallas_call(
        _conv3d_matmul_kernel,
        out_shape=jax.ShapeDtypeStruct((Mp, Cp), jnp.float32),
        grid=(num_tiles,),
        in_specs=[
            pl.BlockSpec((TM, Kp), lambda i: (i, 0)),
            pl.BlockSpec((Kp, Cp), lambda i: (0, 0)),
            pl.BlockSpec((1, Cp), lambda i: (0, 0)),
        ],
        out_specs=pl.BlockSpec((TM, Cp), lambda i: (i, 0)),
        compiler_params=pltpu.CompilerParams(
            dimension_semantics=("parallel",)),
    )(patches_p, w_p, b_p)

    # Slice off padding, restore NCDHW (required by the module's output spec).
    out = out_p[:M, :C_out].reshape(N, Do, Ho, Wo, C_out)
    out = jnp.transpose(out, (0, 4, 1, 2, 3))                # (N, Cout, Do, Ho, Wo)
    return out


if __name__ == "__main__":
    in_channels, out_channels, kernel_size = 3, 64, 3
    N, D, H, W = 2, 8, 10, 12  # small asymmetric spatial input

    key = jax.random.PRNGKey(0)
    kx, kwt = jax.random.split(key)
    x = jax.random.normal(kx, (N, in_channels, D, H, W), dtype=jnp.float32)

    # deterministic kaiming_uniform(a=sqrt(5)) equivalent: bound = 1/sqrt(fan_in)
    fan_in = in_channels * kernel_size ** 3
    bound = 1.0 / (fan_in ** 0.5)
    weight = jax.random.uniform(
        kwt, (out_channels, in_channels, kernel_size, kernel_size, kernel_size),
        minval=-bound, maxval=bound, dtype=jnp.float32)

    out = conv3d_pallas(x, weight)           # module default: bias=False
    out = jax.block_until_ready(out)

    # Reference check against XLA's conv (f32).  Kernel uses bf16 operands with
    # f32 MXU accumulation, so compare at bf16-level tolerance.
    ref = jax.lax.conv_general_dilated(
        x, weight, window_strides=(1, 1, 1), padding="VALID",
        dimension_numbers=("NCDHW", "OIDHW", "NCDHW"),
        precision=jax.lax.Precision.HIGHEST)
    assert out.shape == ref.shape == (N, out_channels, D - 2, H - 2, W - 2)
    max_err = float(jnp.max(jnp.abs(out - ref)))
    assert jnp.allclose(out, ref, rtol=3e-2, atol=3e-2), f"max abs err {max_err}"

    print("KERNEL_OK")
</pallas_src>

<mosaic_0001>
module attributes {stable_mosaic.version = 11 : i64} {
  func.func @_conv3d_matmul_kernel(%arg0: i32, %arg1: memref<480x128xbf16, #tpu.memory_space<vmem>>, %arg2: memref<128x128xbf16, #tpu.memory_space<vmem>>, %arg3: memref<1x128xf32, #tpu.memory_space<vmem>>, %arg4: memref<480x128xf32, #tpu.memory_space<vmem>>) attributes {dimension_semantics = [#tpu.dimension_semantics<parallel>], iteration_bounds = array<i64: 2>, scalar_prefetch = 0 : i64, scratch_operands = 0 : i64, tpu.core_type = #tpu.core_type<tc>, window_params = [{transform_indices = @transform_0, window_bounds = array<i64: 480, 128>}, {pipeline_mode = #tpu.pipeline_mode<synchronous>, transform_indices = @transform_1, window_bounds = array<i64: 128, 128>}, {pipeline_mode = #tpu.pipeline_mode<synchronous>, transform_indices = @transform_2, window_bounds = array<i64: 1, 128>}, {transform_indices = @transform_3, window_bounds = array<i64: 480, 128>}]} {
    %c0 = arith.constant 0 : index
    %c0_0 = arith.constant 0 : index
    %0 = vector.load %arg1[%c0, %c0_0] : memref<480x128xbf16, #tpu.memory_space<vmem>>, vector<480x128xbf16>
    %c0_1 = arith.constant 0 : index
    %c0_2 = arith.constant 0 : index
    %1 = vector.load %arg2[%c0_1, %c0_2] : memref<128x128xbf16, #tpu.memory_space<vmem>>, vector<128x128xbf16>
    %cst = arith.constant dense<0.000000e+00> : vector<480x128xf32>
    %2 = tpu.matmul %0, %1, %cst {dimension_numbers = #tpu.dot_dimension_numbers<[1], [0], [0], [1], [0, 0, 1, 1], [], []>} : vector<480x128xbf16>, vector<128x128xbf16>, vector<480x128xf32> -> vector<480x128xf32>
    %c0_3 = arith.constant 0 : index
    %c0_4 = arith.constant 0 : index
    %3 = vector.load %arg3[%c0_3, %c0_4] : memref<1x128xf32, #tpu.memory_space<vmem>>, vector<1x128xf32>
    %4 = vector.broadcast %3 : vector<1x128xf32> to vector<480x128xf32>
    %5 = arith.addf %2, %4 : vector<480x128xf32>
    %c0_5 = arith.constant 0 : index
    %c0_6 = arith.constant 0 : index
    %6 = vector.load %arg4[%c0_5, %c0_6] : memref<480x128xf32, #tpu.memory_space<vmem>>, vector<480x128xf32>
    tpu.vector_store %arg4[%c0_5, %c0_6], %5 {strides = array<i32>} : memref<480x128xf32, #tpu.memory_space<vmem>>, vector<480x128xf32>,
    return
  }
  func.func @transform_0(%arg0: i32) -> (i32, i32) {
    %c0_i32 = arith.constant 0 : i32
    %c0_i32_0 = arith.constant 0 : i32
    return %arg0, %c0_i32 : i32, i32
  }
  func.func @transform_1(%arg0: i32) -> (i32, i32) {
    %c0_i32 = arith.constant 0 : i32
    %c0_i32_0 = arith.constant 0 : i32
    %c0_i32_1 = arith.constant 0 : i32
    return %c0_i32, %c0_i32_0 : i32, i32
  }
  func.func @transform_2(%arg0: i32) -> (i32, i32) {
    %c0_i32 = arith.constant 0 : i32
    %c0_i32_0 = arith.constant 0 : i32
    %c0_i32_1 = arith.constant 0 : i32
    return %c0_i32, %c0_i32_0 : i32, i32
  }
  func.func @transform_3(%arg0: i32) -> (i32, i32) {
    %c0_i32 = arith.constant 0 : i32
    %c0_i32_0 = arith.constant 0 : i32
    return %arg0, %c0_i32 : i32, i32
  }
}

</mosaic_0001>

<bundles_post_ra>
// kernel: tpu_custom_call.1
= control target key start
LH: loop header
LB: loop body
LE: loop exit
PB: predicated region body
PF: predicated region fallthrough
CT: control target
= control target key end

     0   :  { %8 = vsyncpa [#allocation3], 0  ;;  %s1756_s0 = inlined_call_operand.hbm [shape: bf16[960,128], index: 0, kind: input, shape index: {}]   ;;  %s1757_s1 = inlined_call_operand.hbm [shape: bf16[128,128], index: 1, kind: input, shape index: {}]   ;;  %s1758_s2 = inlined_call_operand.vmem [shape: f32[1,128], index: 2, kind: input, shape index: {}]   ;;  %s1759_s3 = inlined_call_operand.hbm [shape: f32[960,128], index: 3, kind: output, shape index: {}]  }
   0x1   :  { %10 = vsyncpa [#allocation3 + $0x1], 0 }
   0x2   :  { %11 = vsyncpa [#allocation6], 0 }
   0x3   :  { %12 = vsyncpa [#allocation4], 0 }
   0x4   :  { %14 = vsyncpa [#allocation4 + $0x1], 0  ;;  %s1388_s12 = smov 0   ;;  %s1390_s13 = smov 0  }
   0x5   :  { %s1392_s14 = smov 0   ;;  %s1394_s15 = smov 0  }
   0x6 LB: > { %s1409_s16 = sadd.s32 4294967295, %s1359_s15   ;;  %s948_s17 = sadd.s32 4294967294, %s1359_s15   ;;  %s1359_s15 = sphi %s1394_s15, %s1779_s15   ;;  %s1355_s14 = sphi %s1392_s14, %s1778_s14   ;;  %s1351_s13 = sphi %s1390_s13, %s1777_s13   ;;  %s1347_s12 = sphi %s1388_s12, %s1776_s12  }
   0x7   : > { %p40_p0 = scmp.ne.s32.totalorder %s1351_s13, %s1347_s12  ;;  %p1760_p1 = scmp.eq.s32.totalorder %s1409_s16, 0 }
   0x8   : > { %p112_p3 = scmp.eq.s32.totalorder %s948_s17, 1  ;;  %p949_p5 = scmp.ge.s32.totalorder %s1359_s15, 1 }
   0x9   : > { %p1418_p4 = por %p1760_p1, %p40_p0  ;;  %p119_p7 = scmp.lt.s32.totalorder %s1359_s15, 3 }
   0xa   : > { %p1423_p6 = por %p112_p3, %p40_p0  ;;  %s1361_s21 = smov [#allocation5]  }
   0xb   : > { %s1763_s18 = scalar_select %p1418_p4, 1, 0 }
   0xc   : > { %s1764_s19 = scalar_select %p1423_p6, 1, 0 }
   0xd   : > { %p1428_p8 = pnand %p949_p5, %p119_p7  ;;  %s131_s22 = sshll.u32 %s1361_s21, 4  ;;  %s1432_s22 = int_to_ptr.vmem [resolvable:$true] %s131_s22 }
   0xe   : > { %s1444_s24 = sadd.s32 1, %s1359_s15   ;;  %s27_s25 = sadd.s32 1, %s1355_s14 }
   0xf   : > { %s1765_s20 = scalar_select %p1428_p8, 1, 0 }
  0x10   : > { %p1140_p9 = pneg %p1428_p8  ;;  %s24_s26 = ssub.s32 %s1359_s15, %s1444_s24 }
  0x11   : > { %s1231_s29 = scalar_lea.hbm %s1757_s1, 1024 }
  0x12   : > { %p1439_p11 = pnand %p1140_p9, %p1760_p1  ;;  %p1232_p12 = scmp.ne.s32.totalorder %s1757_s1, %s1231_s29 }
  0x13   : > { %p1238_p5 = scmp.lt.u32.totalorder %s1231_s29, %s1757_s1 }
  0x14   : > { %p1233_p13 = pneg %p1439_p11 }
  0x16   : > { %p1234_p0 = pnand %p1233_p13, %p1232_p12 }
  0x18   : > { %p1235_p3 = pneg %p1234_p0 }
  0x1a   : > { %p1240_p7 = pnand %p1238_p5, %p1235_p3 }
  0x1c   : > { %1243 = shalt.err (!%p1240_p7)
}
  0x1d   : > { %s1244_s7 = scalar_lea.vmem %s1432_s22, 1024  ;;  %p1252_p2 = scmp.lt.s32.totalorder %s1432_s22, %s1432_s22 }
  0x1e   : > { %p1245_p9 = scmp.ne.s32.totalorder %s1432_s22, %s1244_s7  ;;  %p1253_p6 = scmp.lt.s32.totalorder %s1244_s7, %s1244_s7 }
  0x20   : > { %p1247_p10 = pnand %p1245_p9, %p1233_p13  ;;  %p1254_p4 = por %p1253_p6, %p1252_p2 }
  0x22   : > { %p1248_p1 = pneg %p1247_p10 }
  0x24   : > { %p1255_p8 = pnand %p1254_p4, %p1248_p1 }
  0x26   : > { %1258 = shalt.err (!%p1255_p8)
}
  0x27   : > { %s1362_s8 = smov 64   ;;  %s1363_s9 = smov 4  }
  0x28   : > { %1143 = dma.hbm_to_vmem [thread:$0]  (!%p1439_p11), %s1757_s1, 1024, %s1432_s22, [#allocation6], %s1362_s8, %s1362_s8, %s1363_s9  }
  0x29   : > { %p25_p1 = scmp.eq.s32.totalorder %s24_s26, 0  ;;  %p34_p2 = scmp.ne.s32.totalorder %s1355_s14, %s1351_s13 }
  0x2a   : > { %p35_p4 = scmp.eq.s32.totalorder %s1359_s15, 0  ;;  %p1153_p6 = scmp.lt.s32.totalorder %s1359_s15, 2 }
  0x2b   : > { %s1478_s17 = scalar_select %p25_p1, %s1355_s14, %s27_s25  }
  0x2c   : > { %p36_p8 = por %p35_p4, %p34_p2  ;;  %p1767_p10 = scmp.eq.s32.totalorder %s1409_s16, 1 }
  0x2d   : > { %s148_s23 = sand.u32 1, %s1355_s14   ;;  %s997_s27 = smul.u32 3840, %s1359_s15 }
  0x2e   : > { %p1482_p12 = por %p1767_p10, %p34_p2  ;;  %s1129_s28 = smul.u32 240, %s148_s23 }
  0x2f   : > { %p1488_p13 = pnand %p1153_p6, %p36_p8  ;;  %s1495_s25 = scalar_lea.hbm %s1756_s0, %s997_s27 }
  0x30   : > { %s152_s30 = scalar_lea.vmem [#allocation2], %s1129_s28  ;;  %s1499_s5 = scalar_lea.sflag [#allocation3], %s148_s23 }
  0x31   : > { %s159_s4 = sshll.u32 %s152_s30, 4  ;;  %s1259_s6 = scalar_lea.hbm %s1495_s25, 3840  ;;  %s1497_s4 = int_to_ptr.vmem [resolvable:$true] %s159_s4 }
  0x32   : > { %p1260_p11 = scmp.ne.s32.totalorder %s1495_s25, %s1259_s6  ;;  %p1261_p0 = pneg %p1488_p13 }
  0x33   : > { %s1264_s11 = scalar_lea.hbm %s1756_s0, 7680  ;;  %p1265_p7 = scmp.lt.u32.totalorder %s1495_s25, %s1756_s0 }
  0x34   : > { %p1262_p3 = pnand %p1261_p0, %p1260_p11  ;;  %p1266_p9 = scmp.lt.u32.totalorder %s1264_s11, %s1259_s6 }
  0x35   : > { %p1268_p2 = scmp.lt.u32.totalorder %s1259_s6, %s1495_s25 }
  0x36   : > { %p1263_p5 = pneg %p1262_p3  ;;  %p1267_p1 = por %p1266_p9, %p1265_p7 }
  0x38   : > { %p1269_p4 = por %p1268_p2, %p1267_p1 }
  0x3a   : > { %p1270_p6 = pnand %p1269_p4, %p1263_p5 }
  0x3c   : > { %1273 = shalt.err (!%p1270_p6)
}
  0x3d   : > { %s1274_s23 = scalar_lea.vmem %s1497_s4, 3840  ;;  %s1364_s28 = smov [#allocation2]  }
  0x3e   : > { %p1275_p8 = scmp.ne.s32.totalorder %s1497_s4, %s1274_s23  ;;  %s1279_s26 = sshll.u32 %s1364_s28, 4  ;;  %s1280_s26 = int_to_ptr.vmem [resolvable:$false] %s1279_s26 }
  0x3f   : > { %s1281_s30 = scalar_lea.vmem %s1280_s26, 7680  ;;  %p1282_p3 = scmp.lt.s32.totalorder %s1497_s4, %s1280_s26 }
  0x40   : > { %p1277_p10 = pnand %p1275_p8, %p1261_p0  ;;  %p1283_p7 = scmp.lt.s32.totalorder %s1281_s30, %s1274_s23 }
  0x42   : > { %p1278_p11 = pneg %p1277_p10  ;;  %p1284_p9 = por %p1283_p7, %p1282_p3 }
  0x44   : > { %p1285_p1 = pnand %p1284_p9, %p1278_p11 }
  0x46   : > { %1288 = shalt.err (!%p1285_p1)
}
  0x47   : > { %1147 = dma.hbm_to_vmem [thread:$0]  (!%p1488_p13), %s1495_s25, 3840, %s1497_s4, %s1499_s5, %s1362_s8, %s1362_s8, %s1363_s9  }
  0x48   : > { %p1770_p0 = scmp.ne.s32.totalorder %s1765_s20, 0 }
  0x49   : > { %s1533_s6 = sand.u32 (!%p1770_p0), 1, %s1351_s13   ;;  %p1771_p5 = scmp.ne.s32.totalorder (!%p1770_p0), %s1763_s18, 0 }
  0x4a   : > { %171 = sbr.rel (%p1770_p0) target bundleno = 406 (0x196), region = 32  ;;  %s174_s10 = scalar_lea.sflag (!%p1770_p0), [#allocation3], %s1533_s6 }
  0x4b   : > { %s1130_s7 = smul.u32 (!%p1770_p0), 240, %s1533_s6 }
  0x4d   : > { %s1537_s11 = scalar_lea.vmem (!%p1770_p0), [#allocation2], %s1130_s7 }
  0x51   : > { %1334 = dma.done.wait (%p1771_p5), %s174_s10, 3840  }
  0x52   : > { %1336 = vsyncadd (%p1771_p5), %s174_s10, 4294963456  ;;  %p1772_p13 = scmp.eq.s32.totalorder %s1409_s16, 0 }
  0x54   : > { %1338 = dma.done.wait (%p1772_p13), [#allocation6], 1024   ;;  %p1773_p2 = pmov %p1772_p13 }
  0x55   : > { %v1193_v0 = vld [vmem:[#allocation5] sm:$0xff]   ;;  %v1194_v1 = vld [vmem:[#allocation5 + $0x8] sm:$0xff]   ;;  %v1195_v2 = vld [vmem:[#allocation5 + $0x10] sm:$0xff]   ;;  %s1131_s18 = smul.u32 480, %s1533_s6  ;;  %s1365_s23 = smov [#allocation7]  }
  0x56   : > { %1340 = vsyncadd (%p1773_p2), [#allocation6], 4294966272  ;;  %1037 = vmatprep.subr.bf16.mxu0 %v1193_v0  ;;  %1113 = vmatprep.subr.bf16.mxu1 %v1193_v0  ;;  %v1196_v3 = vld [vmem:[#allocation5 + $0x18] sm:$0xff]   ;;  %v1201_v4 = vld [vmem:[%s1537_s11] sm:$0xff]   ;;  %s998_s29 = smul.u32 7680, %s1409_s16  ;;  %s852_s16 = scalar_lea.sflag [#allocation4], %s1533_s6 }
  0x57   : > { %1038 = vmatpush3.bf16.msra.mxu0 %v1193_v0  ;;  %1121 = vmatpush3.bf16.msra.mxu1 %v1193_v0  ;;  %v1203_v5 = vld [vmem:[%s1537_s11 + $0x80] sm:$0xff]   ;;  %v1198_v7 = vld [vmem:[#allocation5 + $0x28] sm:$0xff]   ;;  %v1200_v9 = vld [vmem:[#allocation5 + $0x38] sm:$0xff]   ;;  %s1587_s9 = scalar_lea.vmem [#allocation7], %s1131_s18  ;;  %s1293_s28 = sshll.u32 %s1365_s23, 4  ;;  %s1294_s28 = int_to_ptr.vmem [resolvable:$false] %s1293_s28 }
  0x58   : > { %1039 = vmatprep.subr.bf16.mxu0 %v1194_v1  ;;  %1114 = vmatprep.subr.bf16.mxu1 %v1194_v1  ;;  %v1197_v6 = vld [vmem:[#allocation5 + $0x20] sm:$0xff]   ;;  %v1199_v8 = vld [vmem:[#allocation5 + $0x30] sm:$0xff]   ;;  %v1202_v10 = vld [vmem:[%s1537_s11 + $0x8] sm:$0xff]   ;;  %s865_s25 = sshll.u32 %s1587_s9, 4  ;;  %s1706_s27 = scalar_lea.hbm %s1759_s3, %s998_s29  ;;  %s1708_s25 = int_to_ptr.vmem [resolvable:$true] %s865_s25 }
  0x59   : > { %1053 = vmatprep.mubr.bf16.mxu0 %v1201_v4  ;;  %1085 = vmatprep.mubr.bf16.mxu1 %v1203_v5  ;;  %v1204_v11 = vld [vmem:[%s1537_s11 + $0x88] sm:$0xff]   ;;  %v1205_v12 = vld [vmem:[%s1537_s11 + $0x10] sm:$0xff]   ;;  %v1206_v14 = vld [vmem:[%s1537_s11 + $0x18] sm:$0xff]   ;;  %s1289_s22 = scalar_lea.vmem %s1708_s25, 7680  ;;  %s1295_s26 = scalar_lea.vmem %s1294_s28, 15360 }
  0x5a   : > { %v1207_v13 = vld [vmem:[%s1537_s11 + $0x90] sm:$0xff]   ;;  %v1208_v15 = vld [vmem:[%s1537_s11 + $0x98] sm:$0xff]   ;;  %v1209_v16 = vld [vmem:[%s1537_s11 + $0x20] sm:$0xff]   ;;  %p1290_p4 = scmp.ne.s32.totalorder %s1708_s25, %s1289_s22  ;;  %p1296_p10 = scmp.lt.s32.totalorder %s1708_s25, %s1294_s28 }
  0x5b   : > { %1040 = vmatpush3.bf16.msra.mxu0 %v1194_v1  ;;  %1122 = vmatpush3.bf16.msra.mxu1 %v1194_v1  ;;  %v1211_v17 = vld [vmem:[%s1537_s11 + $0xa0] sm:$0xff]   ;;  %v1210_v18 = vld [vmem:[%s1537_s11 + $0x28] sm:$0xff]   ;;  %v1213_v20 = vld [vmem:[%s1537_s11 + $0x30] sm:$0xff]   ;;  %p1297_p11 = scmp.lt.s32.totalorder %s1295_s26, %s1289_s22 }
  0x5c   : > { %1041 = vmatprep.subr.bf16.mxu0 %v1195_v2  ;;  %1115 = vmatprep.subr.bf16.mxu1 %v1195_v2  ;;  %v1212_v19 = vld [vmem:[%s1537_s11 + $0xa8] sm:$0xff]   ;;  %v1215_v21 = vld [vmem:[%s1537_s11 + $0xb0] sm:$0xff]   ;;  %v1214_v22 = vld [vmem:[%s1537_s11 + $0x38] sm:$0xff]   ;;  %p1291_p6 = pnand %p1290_p4, %p1482_p12 }
  0x5d   : > { %v1216_v23 = vld [vmem:[%s1537_s11 + $0xb8] sm:$0xff]   ;;  %v1217_v24 = vld [vmem:[%s1537_s11 + $0x40] sm:$0xff]   ;;  %v1218_v26 = vld [vmem:[%s1537_s11 + $0x48] sm:$0xff]   ;;  %p1298_p3 = por %p1297_p11, %p1296_p10 }
  0x5e   : > { %v1219_v25 = vld [vmem:[%s1537_s11 + $0xc0] sm:$0xff]   ;;  %v1220_v27 = vld [vmem:[%s1537_s11 + $0xc8] sm:$0xff]   ;;  %v1221_v28 = vld [vmem:[%s1537_s11 + $0x50] sm:$0xff]   ;;  %p1292_p8 = pneg %p1291_p6 }
  0x5f   : > { %1042 = vmatpush3.bf16.msra.mxu0 %v1195_v2  ;;  %1123 = vmatpush3.bf16.msra.mxu1 %v1195_v2  ;;  %v1223_v29 = vld [vmem:[%s1537_s11 + $0xd0] sm:$0xff]   ;;  %v1222_v30 = vld [vmem:[%s1537_s11 + $0x58] sm:$0xff]   ;;  %v1225_v32 = vld [vmem:[%s1537_s11 + $0x60] sm:$0xff]  }
  0x60   : > { %1043 = vmatprep.subr.bf16.mxu0 %v1196_v3  ;;  %1116 = vmatprep.subr.bf16.mxu1 %v1196_v3  ;;  %v1224_v31 = vld [vmem:[%s1537_s11 + $0xd8] sm:$0xff]   ;;  %v1227_v33 = vld [vmem:[%s1537_s11 + $0xe0] sm:$0xff]   ;;  %v1226_v34 = vld [vmem:[%s1537_s11 + $0x68] sm:$0xff]   ;;  %p1299_p7 = pnand %p1298_p3, %p1292_p8 }
  0x61   : > { %v1228_v35 = vld [vmem:[%s1537_s11 + $0xe8] sm:$0xff]   ;;  %v1229_v36 = vld [vmem:[%s1537_s11 + $0x70] sm:$0xff]   ;;  %v1230_v37 = vld [vmem:[%s1537_s11 + $0x78] sm:$0xff]  }
  0x62   : > { %v1581_v38 = vld [vmem:[%s1758_s2] ss:$0 sm:$0xff] }
  0x63   : > { %1044 = vmatpush3.bf16.msra.mxu0 %v1196_v3  ;;  %1124 = vmatpush3.bf16.msra.mxu1 %v1196_v3 }
  0x64   : > { %1045 = vmatprep.subr.bf16.mxu0 %v1197_v6  ;;  %1117 = vmatprep.subr.bf16.mxu1 %v1197_v6 }
  0x67   : > { %1046 = vmatpush3.bf16.msra.mxu0 %v1197_v6  ;;  %1125 = vmatpush3.bf16.msra.mxu1 %v1197_v6 }
  0x68   : > { %1047 = vmatprep.subr.bf16.mxu0 %v1198_v7  ;;  %1118 = vmatprep.subr.bf16.mxu1 %v1198_v7 }
  0x6b   : > { %1048 = vmatpush3.bf16.msra.mxu0 %v1198_v7  ;;  %1126 = vmatpush3.bf16.msra.mxu1 %v1198_v7 }
  0x6c   : > { %1049 = vmatprep.subr.bf16.mxu0 %v1199_v8  ;;  %1119 = vmatprep.subr.bf16.mxu1 %v1199_v8 }
  0x6f   : > { %1050 = vmatpush3.bf16.msra.mxu0 %v1199_v8  ;;  %1127 = vmatpush3.bf16.msra.mxu1 %v1199_v8 }
  0x70   : > { %1051 = vmatprep.subr.bf16.mxu0 %v1200_v9  ;;  %1120 = vmatprep.subr.bf16.mxu1 %v1200_v9 }
  0x73   : > { %1052 = vmatpush3.bf16.msra.mxu0 %v1200_v9  ;;  %1128 = vmatpush3.bf16.msra.mxu1 %v1200_v9 }
  0x76   : > { %1054 = vmatmul.mubr.bf16.vlgmr.msra.gmra.mrb[0].mxu0 %v1202_v10  ;;  %1086 = vmatmul.mubr.bf16.vlgmr.msra.gmra.mrb[0].mxu1 %v1204_v11 }
  0x77   : > { %1057 = vmatprep.mubr.bf16.mxu0 %v1205_v12  ;;  %1089 = vmatprep.mubr.bf16.mxu1 %v1207_v13 }
  0x7e   : > { %1058 = vmatmul.mubr.bf16.gmra.mrb[4].mxu0 %v1206_v14  ;;  %1090 = vmatmul.mubr.bf16.gmra.mrb[4].mxu1 %v1208_v15 }
  0x7f   : > { %1061 = vmatprep.mubr.bf16.mxu0 %v1209_v16  ;;  %1093 = vmatprep.mubr.bf16.mxu1 %v1211_v17 }
  0x86   : > { %1062 = vmatmul.mubr.bf16.gmra.mrb[8].mxu0 %v1210_v18  ;;  %1094 = vmatmul.mubr.bf16.gmra.mrb[8].mxu1 %v1212_v19 }
  0x87   : > { %1065 = vmatprep.mubr.bf16.mxu0 %v1213_v20  ;;  %1097 = vmatprep.mubr.bf16.mxu1 %v1215_v21 }
  0x8e   : > { %1066 = vmatmul.mubr.bf16.gmra.mrb[12].mxu0 %v1214_v22  ;;  %1098 = vmatmul.mubr.bf16.gmra.mrb[12].mxu1 %v1216_v23 }
  0x8f   : > { %1069 = vmatprep.mubr.bf16.mxu0 %v1217_v24  ;;  %1101 = vmatprep.mubr.bf16.mxu1 %v1219_v25 }
  0x96   : > { %1070 = vmatmul.mubr.bf16.gmra.mrb[16].mxu0 %v1218_v26  ;;  %1102 = vmatmul.mubr.bf16.gmra.mrb[16].mxu1 %v1220_v27 }
  0x97   : > { %1073 = vmatprep.mubr.bf16.mxu0 %v1221_v28  ;;  %1105 = vmatprep.mubr.bf16.mxu1 %v1223_v29 }
  0x9e   : > { %1074 = vmatmul.mubr.bf16.gmra.mrb[20].mxu0 %v1222_v30  ;;  %1106 = vmatmul.mubr.bf16.gmra.mrb[20].mxu1 %v1224_v31 }
  0x9f   : > { %1077 = vmatprep.mubr.bf16.mxu0 %v1225_v32  ;;  %1109 = vmatprep.mubr.bf16.mxu1 %v1227_v33 }
  0xa6   : > { %1078 = vmatmul.mubr.bf16.gmra.mrb[24].mxu0 %v1226_v34  ;;  %1110 = vmatmul.mubr.bf16.gmra.mrb[24].mxu1 %v1228_v35 }
  0xa7   : > { %1081 = vmatprep.mubr.bf16.mxu0 %v1229_v36 }
  0xae   : > { %1082 = vmatmul.mubr.bf16.gmra.mrb[28].mxu0 %v1230_v37 }
 0x149   : > { %v1055_v39 = vpop.f32.mrb[0].mxu0  ;;  %v1087_v40 = vpop.f32.mrb[0].mxu1 }
 0x14a   : > { %v561_v41 = vadd.f32 %v1055_v39, %v1581_v38  ;;  %v552_v42 = vpop.f32.mrb[1].mxu0  ;;  %v689_v43 = vadd.f32 %v1087_v40, %v1581_v38  ;;  %v680_v44 = vpop.f32.mrb[1].mxu1 }
 0x14b   : > { %v553_v45 = vadd.f32 %v1581_v38, %v552_v42  ;;  %v1056_v46 = vpop.f32.mrb[2].mxu0  ;;  %v681_v47 = vadd.f32 %v1581_v38, %v680_v44  ;;  %v1088_v48 = vpop.f32.mrb[2].mxu1 }
 0x14c   : > { %793 = vst [vmem:[%s1587_s9 + $0x10] sm:$0xff] %v561_v41  ;;  %v564_v49 = vadd.f32 %v1056_v46, %v1581_v38  ;;  %v555_v50 = vpop.f32.mrb[3].mxu0  ;;  %825 = vst [vmem:[%s1587_s9 + $0x110] sm:$0xff] %v689_v43  ;;  %v692_v51 = vadd.f32 %v1088_v48, %v1581_v38  ;;  %v683_v52 = vpop.f32.mrb[3].mxu1 }
 0x14d   : > { %791 = vst [vmem:[%s1587_s9] sm:$0xff] %v553_v45  ;;  %v556_v53 = vadd.f32 %v1581_v38, %v555_v50  ;;  %823 = vst [vmem:[%s1587_s9 + $0x100] sm:$0xff] %v681_v47  ;;  %v684_v54 = vadd.f32 %v1581_v38, %v683_v52 }
 0x14e   : > { %794 = vst [vmem:[%s1587_s9 + $0x18] sm:$0xff] %v564_v49  ;;  %826 = vst [vmem:[%s1587_s9 + $0x118] sm:$0xff] %v692_v51 }
 0x14f   : > { %792 = vst [vmem:[%s1587_s9 + $0x8] sm:$0xff] %v556_v53  ;;  %824 = vst [vmem:[%s1587_s9 + $0x108] sm:$0xff] %v684_v54 }
 0x151   : > { %v1059_v55 = vpop.f32.mrb[4].mxu0  ;;  %v1091_v56 = vpop.f32.mrb[4].mxu1 }
 0x152   : > { %v577_v57 = vadd.f32 %v1059_v55, %v1581_v38  ;;  %v568_v58 = vpop.f32.mrb[5].mxu0  ;;  %v705_v59 = vadd.f32 %v1091_v56, %v1581_v38  ;;  %v696_v60 = vpop.f32.mrb[5].mxu1 }
 0x153   : > { %v569_v61 = vadd.f32 %v1581_v38, %v568_v58  ;;  %v1060_v62 = vpop.f32.mrb[6].mxu0  ;;  %v697_v63 = vadd.f32 %v1581_v38, %v696_v60  ;;  %v1092_v0 = vpop.f32.mrb[6].mxu1 }
 0x154   : > { %797 = vst [vmem:[%s1587_s9 + $0x30] sm:$0xff] %v577_v57  ;;  %v580_v1 = vadd.f32 %v1060_v62, %v1581_v38  ;;  %v571_v2 = vpop.f32.mrb[7].mxu0  ;;  %829 = vst [vmem:[%s1587_s9 + $0x130] sm:$0xff] %v705_v59  ;;  %v708_v3 = vadd.f32 %v1092_v0, %v1581_v38  ;;  %v699_v4 = vpop.f32.mrb[7].mxu1 }
 0x155   : > { %795 = vst [vmem:[%s1587_s9 + $0x20] sm:$0xff] %v569_v61  ;;  %v572_v5 = vadd.f32 %v1581_v38, %v571_v2  ;;  %827 = vst [vmem:[%s1587_s9 + $0x120] sm:$0xff] %v697_v63  ;;  %v700_v6 = vadd.f32 %v1581_v38, %v699_v4 }
 0x156   : > { %798 = vst [vmem:[%s1587_s9 + $0x38] sm:$0xff] %v580_v1  ;;  %830 = vst [vmem:[%s1587_s9 + $0x138] sm:$0xff] %v708_v3 }
 0x157   : > { %796 = vst [vmem:[%s1587_s9 + $0x28] sm:$0xff] %v572_v5  ;;  %828 = vst [vmem:[%s1587_s9 + $0x128] sm:$0xff] %v700_v6 }
 0x159   : > { %v1063_v7 = vpop.f32.mrb[8].mxu0  ;;  %v1095_v8 = vpop.f32.mrb[8].mxu1 }
 0x15a   : > { %v593_v9 = vadd.f32 %v1063_v7, %v1581_v38  ;;  %v584_v10 = vpop.f32.mrb[9].mxu0  ;;  %v721_v11 = vadd.f32 %v1095_v8, %v1581_v38  ;;  %v712_v12 = vpop.f32.mrb[9].mxu1 }
 0x15b   : > { %v585_v13 = vadd.f32 %v1581_v38, %v584_v10  ;;  %v1064_v14 = vpop.f32.mrb[10].mxu0  ;;  %v713_v15 = vadd.f32 %v1581_v38, %v712_v12  ;;  %v1096_v16 = vpop.f32.mrb[10].mxu1 }
 0x15c   : > { %801 = vst [vmem:[%s1587_s9 + $0x50] sm:$0xff] %v593_v9  ;;  %v596_v17 = vadd.f32 %v1064_v14, %v1581_v38  ;;  %v587_v18 = vpop.f32.mrb[11].mxu0  ;;  %833 = vst [vmem:[%s1587_s9 + $0x150] sm:$0xff] %v721_v11  ;;  %v724_v19 = vadd.f32 %v1096_v16, %v1581_v38  ;;  %v715_v20 = vpop.f32.mrb[11].mxu1 }
 0x15d   : > { %799 = vst [vmem:[%s1587_s9 + $0x40] sm:$0xff] %v585_v13  ;;  %v588_v21 = vadd.f32 %v1581_v38, %v587_v18  ;;  %831 = vst [vmem:[%s1587_s9 + $0x140] sm:$0xff] %v713_v15  ;;  %v716_v22 = vadd.f32 %v1581_v38, %v715_v20 }
 0x15e   : > { %802 = vst [vmem:[%s1587_s9 + $0x58] sm:$0xff] %v596_v17  ;;  %834 = vst [vmem:[%s1587_s9 + $0x158] sm:$0xff] %v724_v19 }
 0x15f   : > { %800 = vst [vmem:[%s1587_s9 + $0x48] sm:$0xff] %v588_v21  ;;  %832 = vst [vmem:[%s1587_s9 + $0x148] sm:$0xff] %v716_v22 }
 0x161   : > { %v1067_v23 = vpop.f32.mrb[12].mxu0  ;;  %v1099_v24 = vpop.f32.mrb[12].mxu1 }
 0x162   : > { %v609_v25 = vadd.f32 %v1067_v23, %v1581_v38  ;;  %v600_v26 = vpop.f32.mrb[13].mxu0  ;;  %v737_v27 = vadd.f32 %v1099_v24, %v1581_v38  ;;  %v728_v28 = vpop.f32.mrb[13].mxu1 }
 0x163   : > { %v601_v29 = vadd.f32 %v1581_v38, %v600_v26  ;;  %v1068_v30 = vpop.f32.mrb[14].mxu0  ;;  %v729_v31 = vadd.f32 %v1581_v38, %v728_v28  ;;  %v1100_v32 = vpop.f32.mrb[14].mxu1 }
 0x164   : > { %805 = vst [vmem:[%s1587_s9 + $0x70] sm:$0xff] %v609_v25  ;;  %v612_v33 = vadd.f32 %v1068_v30, %v1581_v38  ;;  %v603_v34 = vpop.f32.mrb[15].mxu0  ;;  %837 = vst [vmem:[%s1587_s9 + $0x170] sm:$0xff] %v737_v27  ;;  %v740_v35 = vadd.f32 %v1100_v32, %v1581_v38  ;;  %v731_v36 = vpop.f32.mrb[15].mxu1 }
 0x165   : > { %803 = vst [vmem:[%s1587_s9 + $0x60] sm:$0xff] %v601_v29  ;;  %v604_v37 = vadd.f32 %v1581_v38, %v603_v34  ;;  %835 = vst [vmem:[%s1587_s9 + $0x160] sm:$0xff] %v729_v31  ;;  %v732_v39 = vadd.f32 %v1581_v38, %v731_v36 }
 0x166   : > { %806 = vst [vmem:[%s1587_s9 + $0x78] sm:$0xff] %v612_v33  ;;  %838 = vst [vmem:[%s1587_s9 + $0x178] sm:$0xff] %v740_v35 }
 0x167   : > { %804 = vst [vmem:[%s1587_s9 + $0x68] sm:$0xff] %v604_v37  ;;  %836 = vst [vmem:[%s1587_s9 + $0x168] sm:$0xff] %v732_v39 }
 0x169   : > { %v1071_v40 = vpop.f32.mrb[16].mxu0  ;;  %v1103_v41 = vpop.f32.mrb[16].mxu1 }
 0x16a   : > { %v625_v42 = vadd.f32 %v1071_v40, %v1581_v38  ;;  %v616_v43 = vpop.f32.mrb[17].mxu0  ;;  %v753_v44 = vadd.f32 %v1103_v41, %v1581_v38  ;;  %v744_v45 = vpop.f32.mrb[17].mxu1 }
 0x16b   : > { %v617_v46 = vadd.f32 %v1581_v38, %v616_v43  ;;  %v1072_v47 = vpop.f32.mrb[18].mxu0  ;;  %v745_v48 = vadd.f32 %v1581_v38, %v744_v45  ;;  %v1104_v49 = vpop.f32.mrb[18].mxu1 }
 0x16c   : > { %809 = vst [vmem:[%s1587_s9 + $0x90] sm:$0xff] %v625_v42  ;;  %v628_v50 = vadd.f32 %v1072_v47, %v1581_v38  ;;  %v619_v51 = vpop.f32.mrb[19].mxu0  ;;  %841 = vst [vmem:[%s1587_s9 + $0x190] sm:$0xff] %v753_v44  ;;  %v756_v52 = vadd.f32 %v1104_v49, %v1581_v38  ;;  %v747_v53 = vpop.f32.mrb[19].mxu1 }
 0x16d   : > { %807 = vst [vmem:[%s1587_s9 + $0x80] sm:$0xff] %v617_v46  ;;  %v620_v54 = vadd.f32 %v1581_v38, %v619_v51  ;;  %839 = vst [vmem:[%s1587_s9 + $0x180] sm:$0xff] %v745_v48  ;;  %v748_v55 = vadd.f32 %v1581_v38, %v747_v53 }
 0x16e   : > { %810 = vst [vmem:[%s1587_s9 + $0x98] sm:$0xff] %v628_v50  ;;  %842 = vst [vmem:[%s1587_s9 + $0x198] sm:$0xff] %v756_v52 }
 0x16f   : > { %808 = vst [vmem:[%s1587_s9 + $0x88] sm:$0xff] %v620_v54  ;;  %840 = vst [vmem:[%s1587_s9 + $0x188] sm:$0xff] %v748_v55 }
 0x171   : > { %v1075_v56 = vpop.f32.mrb[20].mxu0  ;;  %v1107_v57 = vpop.f32.mrb[20].mxu1 }
 0x172   : > { %v641_v58 = vadd.f32 %v1075_v56, %v1581_v38  ;;  %v632_v59 = vpop.f32.mrb[21].mxu0  ;;  %v769_v60 = vadd.f32 %v1107_v57, %v1581_v38  ;;  %v760_v61 = vpop.f32.mrb[21].mxu1 }
 0x173   : > { %v633_v62 = vadd.f32 %v1581_v38, %v632_v59  ;;  %v1076_v63 = vpop.f32.mrb[22].mxu0  ;;  %v761_v0 = vadd.f32 %v1581_v38, %v760_v61  ;;  %v1108_v1 = vpop.f32.mrb[22].mxu1 }
 0x174   : > { %813 = vst [vmem:[%s1587_s9 + $0xb0] sm:$0xff] %v641_v58  ;;  %v644_v2 = vadd.f32 %v1076_v63, %v1581_v38  ;;  %v635_v3 = vpop.f32.mrb[23].mxu0  ;;  %845 = vst [vmem:[%s1587_s9 + $0x1b0] sm:$0xff] %v769_v60  ;;  %v772_v4 = vadd.f32 %v1108_v1, %v1581_v38  ;;  %v763_v5 = vpop.f32.mrb[23].mxu1 }
 0x175   : > { %811 = vst [vmem:[%s1587_s9 + $0xa0] sm:$0xff] %v633_v62  ;;  %v636_v6 = vadd.f32 %v1581_v38, %v635_v3  ;;  %843 = vst [vmem:[%s1587_s9 + $0x1a0] sm:$0xff] %v761_v0  ;;  %v764_v7 = vadd.f32 %v1581_v38, %v763_v5 }
 0x176   : > { %814 = vst [vmem:[%s1587_s9 + $0xb8] sm:$0xff] %v644_v2  ;;  %846 = vst [vmem:[%s1587_s9 + $0x1b8] sm:$0xff] %v772_v4 }
 0x177   : > { %812 = vst [vmem:[%s1587_s9 + $0xa8] sm:$0xff] %v636_v6  ;;  %844 = vst [vmem:[%s1587_s9 + $0x1a8] sm:$0xff] %v764_v7 }
 0x179   : > { %v1079_v8 = vpop.f32.mrb[24].mxu0  ;;  %v1111_v9 = vpop.f32.mrb[24].mxu1 }
 0x17a   : > { %v657_v10 = vadd.f32 %v1079_v8, %v1581_v38  ;;  %v648_v11 = vpop.f32.mrb[25].mxu0  ;;  %v785_v12 = vadd.f32 %v1111_v9, %v1581_v38  ;;  %v776_v13 = vpop.f32.mrb[25].mxu1 }
 0x17b   : > { %v649_v14 = vadd.f32 %v1581_v38, %v648_v11  ;;  %v1080_v15 = vpop.f32.mrb[26].mxu0  ;;  %v777_v16 = vadd.f32 %v1581_v38, %v776_v13  ;;  %v1112_v17 = vpop.f32.mrb[26].mxu1 }
 0x17c   : > { %817 = vst [vmem:[%s1587_s9 + $0xd0] sm:$0xff] %v657_v10  ;;  %v660_v18 = vadd.f32 %v1080_v15, %v1581_v38  ;;  %v651_v19 = vpop.f32.mrb[27].mxu0  ;;  %849 = vst [vmem:[%s1587_s9 + $0x1d0] sm:$0xff] %v785_v12  ;;  %v788_v20 = vadd.f32 %v1112_v17, %v1581_v38  ;;  %v779_v21 = vpop.f32.mrb[27].mxu1 }
 0x17d   : > { %815 = vst [vmem:[%s1587_s9 + $0xc0] sm:$0xff] %v649_v14  ;;  %v652_v22 = vadd.f32 %v1581_v38, %v651_v19  ;;  %847 = vst [vmem:[%s1587_s9 + $0x1c0] sm:$0xff] %v777_v16  ;;  %v780_v23 = vadd.f32 %v1581_v38, %v779_v21 }
 0x17e   : > { %818 = vst [vmem:[%s1587_s9 + $0xd8] sm:$0xff] %v660_v18  ;;  %850 = vst [vmem:[%s1587_s9 + $0x1d8] sm:$0xff] %v788_v20 }
 0x17f   : > { %816 = vst [vmem:[%s1587_s9 + $0xc8] sm:$0xff] %v652_v22  ;;  %848 = vst [vmem:[%s1587_s9 + $0x1c8] sm:$0xff] %v780_v23 }
 0x181   : > { %v1083_v24 = vpop.f32.mrb[28].mxu0 }
 0x182   : > { %v673_v25 = vadd.f32 %v1083_v24, %v1581_v38  ;;  %v664_v26 = vpop.f32.mrb[29].mxu0 }
 0x183   : > { %v665_v27 = vadd.f32 %v1581_v38, %v664_v26  ;;  %v1084_v28 = vpop.f32.mrb[30].mxu0 }
 0x184   : > { %821 = vst [vmem:[%s1587_s9 + $0xf0] sm:$0xff] %v673_v25  ;;  %v676_v29 = vadd.f32 %v1084_v28, %v1581_v38  ;;  %v667_v30 = vpop.f32.mrb[31].mxu0 }
 0x185   : > { %819 = vst [vmem:[%s1587_s9 + $0xe0] sm:$0xff] %v665_v27  ;;  %v668_v31 = vadd.f32 %v1581_v38, %v667_v30 }
 0x186   : > { %822 = vst [vmem:[%s1587_s9 + $0xf8] sm:$0xff] %v676_v29 }
 0x187   : > { %820 = vst [vmem:[%s1587_s9 + $0xe8] sm:$0xff] %v668_v31 }
 0x188   : > { %1302 = shalt.err (!%p1299_p7)
}
 0x189   : > { %s1303_s30 = scalar_lea.hbm %s1706_s27, 7680  ;;  %s1307_s11 = scalar_lea.hbm %s1759_s3, 15360 }
 0x18a   : > { %p1304_p9 = scmp.ne.s32.totalorder %s1706_s27, %s1303_s30  ;;  %p1308_p5 = scmp.lt.u32.totalorder %s1706_s27, %s1759_s3 }
 0x18b   : > { %p1309_p13 = scmp.lt.u32.totalorder %s1307_s11, %s1303_s30  ;;  %p1311_p4 = scmp.lt.u32.totalorder %s1303_s30, %s1706_s27 }
 0x18c   : > { %p1305_p1 = pnand %p1304_p9, %p1482_p12 }
 0x18d   : > { %p1310_p2 = por %p1309_p13, %p1308_p5 }
 0x18e   : > { %p1306_p0 = pneg %p1305_p1 }
 0x18f   : > { %p1312_p6 = por %p1311_p4, %p1310_p2 }
 0x191   : > { %p1313_p8 = pnand %p1312_p6, %p1306_p0 }
 0x193   : > { %1316 = shalt.err (!%p1313_p8)
}
 0x194   : > { %s1366_s8 = smov 128   ;;  %s1367_s9 = smov 8  }
 0x195   : > { %1138 = dma.vmem_to_hbm [thread:$0]  (%p1482_p12), %s1708_s25, 7680, %s1706_s27, %s852_s16, %s1366_s8, %s1366_s8, %s1367_s9  }
 0x196 PF: > { %s880_s29 = sand.u32 1, %s1347_s12   ;;  %p1774_p10 = scmp.ne.s32.totalorder %s1764_s19, 0 }
 0x197   : > { %p1775_p11 = scmp.ge.s32.totalorder %s1359_s15, 2  ;;  %s881_s4 = scalar_lea.sflag [#allocation4], %s880_s29 }
 0x199   : > { %p1149_p3 = pnand %p1775_p11, %p1774_p10 }
 0x19b   : > { %1342 = dma.done.wait (!%p1149_p3), %s881_s4, 7680  }
 0x19c   : > { %1344 = vsyncadd (!%p1149_p3), %s881_s4, 4294959616  ;;  %p17_p7 = scmp.ge.s32.totalorder %s1444_s24, 4   ;;  %s1776_s12 = smov %s1351_s13 }
 0x19d   : > { %s1777_s13 = smov %s1355_s14  ;;  %s1778_s14 = smov %s1478_s17 }
 0x19e   : > { %s1779_s15 = smov %s1444_s24  ;;  %19 = sbr.rel (!%p17_p7) target bundleno = 6 (0x6), region = 81 }
 0x1a5   :  { %886 = vsyncpa [#allocation3], 1 }
 0x1a6   :  { %888 = vsyncpa [#allocation3 + $0x1], 1 }
 0x1a7   :  { %889 = vsyncpa [#allocation6], 1 }
 0x1a8   :  { %890 = vsyncpa [#allocation4], 1 }
 0x1a9   :  { %892 = vsyncpa [#allocation4 + $0x1], 1 }

</bundles_post_ra>
